<compile_context>
chip_gen: v7x
topology: tpu7x:2x2x1
jax: 0.10.0
libtpu: 0.0.40
codegen_flags: <defaults>
</compile_context>

<pallas_src>
import functools

import jax
import jax.numpy as jnp
from jax.experimental import pallas as pl
from jax.experimental.pallas import tpu as pltpu


def _round_up(x, m):
    return (x + m - 1) // m * m


@functools.lru_cache(maxsize=None)
def _vmem_capacity_bytes():
    """Physical VMEM per TensorCore (generation-aware); conservative fallback."""
    try:
        info = pltpu.get_tpu_info()
        for attr in ("vmem_capacity_bytes", "vmem_bytes", "vmem_size_bytes"):
            v = getattr(info, attr, None)
            if v:
                return int(v)
    except Exception:
        pass
    return 64 * 1024 * 1024  # v7x-safe fallback


def _cnn_layer_kernel(x_ref, w_ref, b_ref, m_ref, o_ref, *, out_type):
    """One batch tile of CNNLayer.forward (conv + bias + ReLU + masked pooling).

    x_ref : (Bt, S_pad, CD)   activations, CD = C_in*D (lane-dense, raw layout)
    w_ref : (kw, CD, N_pad)   conv weight per tap, C_out lane-padded to N_pad
    b_ref : (1, N_pad)        conv bias (f32)
    m_ref : (Bt, L_pad, 1)    raw 0/1 mask over output positions (0 where padded)
    o_ref : (1, Bt, N_pad) for 'max'/'mean', (Bt, L_pad, N_pad) for 'all'
    """
    Bt, S_pad, CD = x_ref.shape
    kw = w_ref.shape[0]
    N = w_ref.shape[2]
    L_pad = m_ref.shape[1]

    # In-kernel im2col: kw MXU dots over the SAME lane-dense lhs; the tap shift
    # is applied to the f32 results via cheap sublane value slices.
    xv = x_ref[...].reshape(Bt * S_pad, CD)          # S_pad % 16 == 0 -> clean merge
    acc = None
    for k in range(kw):
        yk = jnp.dot(xv, w_ref[k], preferred_element_type=jnp.float32)
        yk = yk.reshape(Bt, S_pad, N)[:, k:k + L_pad, :]
        acc = yk if acc is None else acc + yk

    acc = jnp.maximum(acc + b_ref[...], 0.0)         # bias + ReLU; dropout = identity

    m = m_ref[...]                                   # (Bt, L_pad, 1) raw mask values
    mbin = jnp.where(m != 0.0, 1.0, 0.0)             # matches mask.bool() semantics

    if out_type == 'max':
        # Additive mask instead of where(): masked rows drop ~1e30 below any
        # valid (ReLU >= 0) value; fully-masked rows then map to 0.
        pooled = jnp.max(acc + (mbin - 1.0) * 1e30, axis=1)          # (Bt, N)
        pooled = jnp.where(pooled < -1e29, 0.0, pooled)
        o_ref[0] = pooled.astype(o_ref.dtype)
    elif out_type == 'mean':
        lens = jnp.sum(m, axis=1)                                    # (Bt, 1) raw-mask sum
        pooled = jnp.sum(acc * mbin, axis=1) / (lens + 1e-9)
        o_ref[0] = pooled.astype(o_ref.dtype)
    else:  # 'all'
        o_ref[...] = (acc * mbin).astype(o_ref.dtype)


@functools.partial(jax.jit,
                   static_argnames=("out_type", "in_channels", "use_bf16_matmul"))
def cnn_layer_forward(inputs, weight, bias, mask=None, out_type='max',
                      in_channels=None, use_bf16_matmul=True):
    """JAX/Pallas equivalent of CNNLayer.forward (inference, act_fun=ReLU).

    inputs : (B, C_in, S, D) or (B, S, D)   (PyTorch NCHW convention)
    weight : (C_out, C_in, kw, D)           (PyTorch Conv2d weight)
    bias   : (C_out,)
    mask   : optional (B, >=L) of 0/1
    use_bf16_matmul : bf16 MXU operands with f32 accumulate (default True;
                      set False for strict f32 parity with the PyTorch module).
    """
    assert out_type in ('max', 'mean', 'all')

    if inputs.ndim == 3:
        assert in_channels is not None, "in_channels required for 3-D inputs"
        assert weight.shape[1] == in_channels
        # PyTorch replicates the same data across in_channels; the conv is
        # linear in C_in, so fold the replication into the weights instead of
        # materializing C_in copies of the activations.
        weight = jnp.sum(weight, axis=1, keepdims=True)
        inputs = inputs[:, None, :, :]

    B, C_in, S, D = inputs.shape
    C_out, C_in_w, kw, D_w = weight.shape
    assert C_in_w == C_in and D_w == D and S >= kw
    L = S - kw + 1
    CD = C_in * D

    if mask is None:
        mask = jnp.ones((B, L), jnp.float32)
    assert mask.ndim == 2
    mask = mask[:, -L:].astype(jnp.float32)          # (B, L)

    in_dtype = jnp.bfloat16 if use_bf16_matmul else jnp.float32
    itemsize = 2 if use_bf16_matmul else 4
    sub = 16 if use_bf16_matmul else 8               # sublane packing of the x dtype

    # ---- padded sizes ---------------------------------------------------------
    L_pad = _round_up(L, 8)                          # aligned output positions
    S_pad = _round_up(L_pad + kw - 1, 16)            # keeps the in-kernel
                                                     # (Bt,S_pad,CD)->(Bt*S_pad,CD)
                                                     # merge sublane-aligned (bf16 too)
    N_pad = _round_up(max(C_out, 128), 128)          # lane-dense output channels
    lane_cd = _round_up(CD, 128)

    # ---- generation-aware VMEM budget & batch tile ----------------------------
    cap = _vmem_capacity_bytes()                               # physical VMEM / core
    target_limit = min(cap * 3 // 4, 100 * 1024 * 1024)        # ~96 MiB v5e/v6e, ~48 MiB v7x

    per_b_x = _round_up(S_pad, sub) * lane_cd * itemsize       # x block, per batch elem
    per_b_m = L_pad * 128 * 4                                  # mask block (lane-padded)
    per_b_o = (L_pad * N_pad * 4) if out_type == 'all' else (8 * N_pad * 4)
    per_b_tmp = (_round_up(S_pad, 16) * (lane_cd * itemsize + N_pad * 4)
                 + 2 * L_pad * N_pad * 4)                      # in-kernel value temps
    w_bytes = kw * _round_up(CD, sub) * N_pad * itemsize
    b_bytes = 8 * N_pad * 4
    fixed = 2 * (w_bytes + b_bytes) + (4 << 20)                # resident blocks + headroom
    per_b = 2 * (per_b_x + per_b_m + per_b_o) + per_b_tmp      # 2x: double-buffered blocks

    bt_vmem = max(1, (target_limit - fixed) // per_b)
    bt_rows = max(1, 1024 // max(L_pad, 1))                    # ~1024 MXU rows per step
    bt_cap = max(1, min(bt_vmem, bt_rows))

    min_steps = 2 if B >= 2 else 1                             # keep both v7x TCs busy
    num_steps = max(min_steps, -(-B // bt_cap))
    Bt = -(-B // num_steps)                                    # ragged-free, minimal pad
    num_steps = max(min_steps, -(-B // Bt))
    B_pad = Bt * num_steps

    est = Bt * per_b + fixed
    vmem_limit = int(min(max(target_limit, est),
                         min(cap * 9 // 10, 110 * 1024 * 1024)))

    # ---- wrapper-side layout (NO im2col blow-up; one fused pass) --------------
    # x3[b, s, c*D + d] = inputs[b, c, s, d]
    x3 = jnp.transpose(inputs, (0, 2, 1, 3)).reshape(B, S, CD).astype(in_dtype)
    x3 = jnp.pad(x3, ((0, B_pad - B), (0, S_pad - S), (0, 0)))
    # w3[k, c*D + d, o] = weight[o, c, k, d]
    w3 = jnp.transpose(weight, (2, 1, 3, 0)).reshape(kw, CD, C_out).astype(in_dtype)
    w3 = jnp.pad(w3, ((0, 0), (0, 0), (0, N_pad - C_out)))
    b2 = jnp.pad(bias.astype(jnp.float32), (0, N_pad - C_out)).reshape(1, N_pad)
    m3 = jnp.pad(mask, ((0, B_pad - B), (0, L_pad - L)))[..., None]   # (B_pad, L_pad, 1)

    # ---- output spec ----------------------------------------------------------
    if out_type == 'all':
        out_shape = jax.ShapeDtypeStruct((B_pad, L_pad, N_pad), jnp.float32)
        out_spec = pl.BlockSpec((Bt, L_pad, N_pad), lambda i: (i, 0, 0))
        out_hbm_bytes = B_pad * L_pad * N_pad * 4
    else:
        # (num_steps, Bt, N_pad): last two block dims == full dims, so Bt needs
        # no sublane alignment and stores stay lane-dense.
        out_shape = jax.ShapeDtypeStruct((num_steps, Bt, N_pad), jnp.float32)
        out_spec = pl.BlockSpec((1, Bt, N_pad), lambda i: (i, 0, 0))
        out_hbm_bytes = B_pad * N_pad * 4

    cost = pl.CostEstimate(
        flops=2 * kw * B_pad * S_pad * CD * N_pad,
        transcendentals=0,
        bytes_accessed=(B_pad * S_pad * CD * itemsize + kw * CD * N_pad * itemsize
                        + N_pad * 4 + B_pad * L_pad * 4 + out_hbm_bytes))

    kernel = functools.partial(_cnn_layer_kernel, out_type=out_type)

    out = pl.pallas_call(
        kernel,
        out_shape=out_shape,
        grid=(num_steps,),
        in_specs=[
            pl.BlockSpec((Bt, S_pad, CD), lambda i: (i, 0, 0)),   # activations (batch tile)
            pl.BlockSpec((kw, CD, N_pad), lambda i: (0, 0, 0)),   # per-tap weights (resident)
            pl.BlockSpec((1, N_pad), lambda i: (0, 0)),           # bias (resident)
            pl.BlockSpec((Bt, L_pad, 1), lambda i: (i, 0, 0)),    # mask
        ],
        out_specs=out_spec,
        compiler_params=pltpu.CompilerParams(
            dimension_semantics=("parallel",),                    # shards across v7x's 2 TCs
            vmem_limit_bytes=vmem_limit),
        cost_estimate=cost,
    )(x3, w3, b2, m3)

    if out_type == 'all':
        return out[:B, :L, :C_out]                                # (B, L, C_out)
    return out.reshape(B_pad, N_pad)[:B, :C_out]                  # (B, C_out)


def init_cnn_layer_params(key, input_size, in_channels, out_channels, kernel_width):
    """Deterministic Conv2d-style init (uniform(-bound, bound), bound=1/sqrt(fan_in))."""
    kw_key, kb_key = jax.random.split(key)
    fan_in = in_channels * kernel_width * input_size
    bound = 1.0 / jnp.sqrt(jnp.float32(fan_in))
    weight = jax.random.uniform(
        kw_key, (out_channels, in_channels, kernel_width, input_size),
        jnp.float32, -bound, bound)
    bias = jax.random.uniform(kb_key, (out_channels,), jnp.float32, -bound, bound)
    return weight, bias


def _cnn_layer_ref(inputs, weight, bias, mask, out_type):
    """Pure-JAX/XLA reference of CNNLayer.forward (verification only)."""
    B, C_in, S, D = inputs.shape
    C_out, _, kw, _ = weight.shape
    L = S - kw + 1
    conv = jax.lax.conv_general_dilated(
        inputs.astype(jnp.float32), weight.astype(jnp.float32),
        window_strides=(1, 1), padding='VALID',
        dimension_numbers=('NCHW', 'OIHW', 'NCHW'))[..., 0]      # (B, C_out, L)
    act = jnp.maximum(conv + bias[None, :, None], 0.0)
    m = mask[:, -L:].astype(jnp.float32)
    mb = (m > 0.0)[:, None, :]                                   # (B, 1, L)
    if out_type == 'max':
        o = jnp.max(jnp.where(mb, act, -jnp.inf), axis=-1)
        return jnp.where(jnp.isinf(o), 0.0, o)
    if out_type == 'mean':
        o = jnp.sum(jnp.where(mb, act, 0.0), axis=-1)
        lens = jnp.sum(m, axis=-1, keepdims=True)
        return o / (lens + 1e-9)
    return jnp.transpose(jnp.where(mb, act, 0.0), (0, 2, 1))


if __name__ == "__main__":
    # Small shapes consistent with the module.
    B, C_in, S, D = 2, 4, 16, 16        # batch, in_channels, max_seq_len, input_size
    C_out, KW = 8, 3                    # out_channels, kernel_width
    L = S - KW + 1

    key = jax.random.PRNGKey(0)
    k_x, k_p, k_x3 = jax.random.split(key, 3)

    x = jax.random.normal(k_x, (B, C_in, S, D), jnp.float32)
    weight, bias = init_cnn_layer_params(k_p, D, C_in, C_out, KW)
    # Simple valid mask (tail of batch element 1 masked out).
    mask = jnp.ones((B, L), jnp.float32).at[1, L - 4:].set(0.0)

    out_max = cnn_layer_forward(x, weight, bias, mask=mask, out_type='max')
    out_mean = cnn_layer_forward(x, weight, bias, mask=mask, out_type='mean')
    out_all = cnn_layer_forward(x, weight, bias, mask=mask, out_type='all')
    # Strict-f32 path (PyTorch numerics parity).
    out_max_f32 = cnn_layer_forward(x, weight, bias, mask=mask, out_type='max',
                                    use_bf16_matmul=False)
    # 3-D input path (module replicates data across channels; kernel folds the
    # replication into the weights).
    x3 = jax.random.normal(k_x3, (B, S, D), jnp.float32)
    out3 = cnn_layer_forward(x3, weight, bias, mask=mask, out_type='max',
                             in_channels=C_in)

    jax.block_until_ready((out_max, out_mean, out_all, out_max_f32, out3))

    assert out_max.shape == (B, C_out)
    assert out_mean.shape == (B, C_out)
    assert out_all.shape == (B, L, C_out)
    assert out_max_f32.shape == (B, C_out)
    assert out3.shape == (B, C_out)

    # Cross-check against a pure-JAX reference.
    for got, ot in ((out_max, 'max'), (out_mean, 'mean'), (out_all, 'all'),
                    (out_max_f32, 'max')):
        ref = _cnn_layer_ref(x, weight, bias, mask, ot)
        err = float(jnp.max(jnp.abs(got - ref)))
        assert err < 5e-2, (ot, err)

    x3_rep = jnp.broadcast_to(x3[:, None, :, :], (B, C_in, S, D))
    ref3 = _cnn_layer_ref(x3_rep, weight, bias, mask, 'max')
    err3 = float(jnp.max(jnp.abs(out3 - ref3)))
    assert err3 < 5e-2, err3

    print("KERNEL_OK")
</pallas_src>

<mosaic_0001>
module attributes {stable_mosaic.version = 11 : i64} {
  func.func @_cnn_layer_kernel(%arg0: i32, %arg1: memref<1x32x64xbf16, #tpu.memory_space<vmem>>, %arg2: memref<3x64x128xbf16, #tpu.memory_space<vmem>>, %arg3: memref<1x128xf32, #tpu.memory_space<vmem>>, %arg4: memref<1x16x1xf32, #tpu.memory_space<vmem>>, %arg5: memref<1x1x128xf32, #tpu.memory_space<vmem>>) attributes {dimension_semantics = [#tpu.dimension_semantics<parallel>], iteration_bounds = array<i64: 2>, scalar_prefetch = 0 : i64, scratch_operands = 0 : i64, tpu.core_type = #tpu.core_type<tc>, window_params = [{transform_indices = @transform_0, window_bounds = array<i64: 1, 32, 64>}, {pipeline_mode = #tpu.pipeline_mode<synchronous>, transform_indices = @transform_1, window_bounds = array<i64: 3, 64, 128>}, {pipeline_mode = #tpu.pipeline_mode<synchronous>, transform_indices = @transform_2, window_bounds = array<i64: 1, 128>}, {transform_indices = @transform_3, window_bounds = array<i64: 1, 16, 1>}, {transform_indices = @transform_4, window_bounds = array<i64: 1, 1, 128>}]} {
    %c0 = arith.constant 0 : index
    %c0_0 = arith.constant 0 : index
    %c0_1 = arith.constant 0 : index
    %0 = vector.load %arg1[%c0, %c0_0, %c0_1] : memref<1x32x64xbf16, #tpu.memory_space<vmem>>, vector<1x32x64xbf16>
    %1 = vector.shape_cast %0 : vector<1x32x64xbf16> to vector<32x64xbf16>
    %c0_2 = arith.constant 0 : index
    %c0_3 = arith.constant 0 : index
    %c0_4 = arith.constant 0 : index
    %2 = vector.load %arg2[%c0_2, %c0_3, %c0_4] : memref<3x64x128xbf16, #tpu.memory_space<vmem>>, vector<1x64x128xbf16>
    %3 = vector.shape_cast %2 : vector<1x64x128xbf16> to vector<64x128xbf16>
    %cst = arith.constant dense<0.000000e+00> : vector<32x128xf32>
    %4 = tpu.matmul %1, %3, %cst {dimension_numbers = #tpu.dot_dimension_numbers<[1], [0], [0], [1], [0, 0, 1, 1], [], []>} : vector<32x64xbf16>, vector<64x128xbf16>, vector<32x128xf32> -> vector<32x128xf32>
    %5 = vector.shape_cast %4 : vector<32x128xf32> to vector<1x32x128xf32>
    %6 = vector.extract_strided_slice %5 {offsets = [0, 0, 0], sizes = [1, 16, 128], strides = [1, 1, 1]} : vector<1x32x128xf32> to vector<1x16x128xf32>
    %c1 = arith.constant 1 : index
    %c0_5 = arith.constant 0 : index
    %c0_6 = arith.constant 0 : index
    %7 = vector.load %arg2[%c1, %c0_5, %c0_6] : memref<3x64x128xbf16, #tpu.memory_space<vmem>>, vector<1x64x128xbf16>
    %8 = vector.shape_cast %7 : vector<1x64x128xbf16> to vector<64x128xbf16>
    %cst_7 = arith.constant dense<0.000000e+00> : vector<32x128xf32>
    %9 = tpu.matmul %1, %8, %cst_7 {dimension_numbers = #tpu.dot_dimension_numbers<[1], [0], [0], [1], [0, 0, 1, 1], [], []>} : vector<32x64xbf16>, vector<64x128xbf16>, vector<32x128xf32> -> vector<32x128xf32>
    %10 = vector.shape_cast %9 : vector<32x128xf32> to vector<1x32x128xf32>
    %11 = vector.extract_strided_slice %10 {offsets = [0, 1, 0], sizes = [1, 16, 128], strides = [1, 1, 1]} : vector<1x32x128xf32> to vector<1x16x128xf32>
    %12 = arith.addf %6, %11 : vector<1x16x128xf32>
    %c2 = arith.constant 2 : index
    %c0_8 = arith.constant 0 : index
    %c0_9 = arith.constant 0 : index
    %13 = vector.load %arg2[%c2, %c0_8, %c0_9] : memref<3x64x128xbf16, #tpu.memory_space<vmem>>, vector<1x64x128xbf16>
    %14 = vector.shape_cast %13 : vector<1x64x128xbf16> to vector<64x128xbf16>
    %cst_10 = arith.constant dense<0.000000e+00> : vector<32x128xf32>
    %15 = tpu.matmul %1, %14, %cst_10 {dimension_numbers = #tpu.dot_dimension_numbers<[1], [0], [0], [1], [0, 0, 1, 1], [], []>} : vector<32x64xbf16>, vector<64x128xbf16>, vector<32x128xf32> -> vector<32x128xf32>
    %16 = vector.shape_cast %15 : vector<32x128xf32> to vector<1x32x128xf32>
    %17 = vector.extract_strided_slice %16 {offsets = [0, 2, 0], sizes = [1, 16, 128], strides = [1, 1, 1]} : vector<1x32x128xf32> to vector<1x16x128xf32>
    %18 = arith.addf %12, %17 : vector<1x16x128xf32>
    %c0_11 = arith.constant 0 : index
    %c0_12 = arith.constant 0 : index
    %19 = vector.load %arg3[%c0_11, %c0_12] : memref<1x128xf32, #tpu.memory_space<vmem>>, vector<1x128xf32>
    %20 = vector.shape_cast %19 : vector<1x128xf32> to vector<1x1x128xf32>
    %21 = vector.broadcast %20 : vector<1x1x128xf32> to vector<1x16x128xf32>
    %22 = arith.addf %18, %21 : vector<1x16x128xf32>
    %cst_13 = arith.constant 0.000000e+00 : f32
    %23 = vector.broadcast %cst_13 : f32 to vector<1x16x128xf32>
    %24 = arith.maximumf %22, %23 : vector<1x16x128xf32>
    %c0_14 = arith.constant 0 : index
    %c0_15 = arith.constant 0 : index
    %c0_16 = arith.constant 0 : index
    %25 = vector.load %arg4[%c0_14, %c0_15, %c0_16] : memref<1x16x1xf32, #tpu.memory_space<vmem>>, vector<1x16x1xf32>
    %cst_17 = arith.constant 0.000000e+00 : f32
    %26 = vector.broadcast %cst_17 : f32 to vector<1x16x1xf32>
    %27 = arith.cmpf one, %25, %26 : vector<1x16x1xf32>
    %cst_18 = arith.constant 1.000000e+00 : f32
    %cst_19 = arith.constant 0.000000e+00 : f32
    %28 = vector.broadcast %cst_18 : f32 to vector<1x16x1xf32>
    %29 = vector.broadcast %cst_19 : f32 to vector<1x16x1xf32>
    %30 = arith.select %27, %28, %29 : vector<1x16x1xi1>, vector<1x16x1xf32>
    %cst_20 = arith.constant 1.000000e+00 : f32
    %31 = vector.broadcast %cst_20 : f32 to vector<1x16x1xf32>
    %32 = arith.subf %30, %31 : vector<1x16x1xf32>
    %cst_21 = arith.constant 1.000000e+30 : f32
    %33 = vector.broadcast %cst_21 : f32 to vector<1x16x1xf32>
    %34 = arith.mulf %32, %33 : vector<1x16x1xf32>
    %35 = vector.broadcast %34 : vector<1x16x1xf32> to vector<1x16x128xf32>
    %36 = arith.addf %24, %35 : vector<1x16x128xf32>
    %cst_22 = arith.constant dense<0xFF800000> : vector<1x128xf32>
    %37 = vector.multi_reduction <maximumf>, %36, %cst_22 [1] : vector<1x16x128xf32> to vector<1x128xf32>
    %cst_23 = arith.constant -1.000000e+29 : f32
    %38 = vector.broadcast %cst_23 : f32 to vector<1x128xf32>
    %39 = arith.cmpf olt, %37, %38 : vector<1x128xf32>
    %cst_24 = arith.constant 0.000000e+00 : f32
    %40 = vector.broadcast %cst_24 : f32 to vector<1x128xf32>
    %41 = arith.select %39, %40, %37 : vector<1x128xi1>, vector<1x128xf32>
    %c0_25 = arith.constant 0 : index
    %c0_26 = arith.constant 0 : index
    %c0_27 = arith.constant 0 : index
    %42 = vector.load %arg5[%c0_25, %c0_26, %c0_27] : memref<1x1x128xf32, #tpu.memory_space<vmem>>, vector<1x1x128xf32>
    %43 = vector.shape_cast %42 : vector<1x1x128xf32> to vector<1x128xf32>
    %44 = vector.shape_cast %41 : vector<1x128xf32> to vector<1x1x128xf32>
    tpu.vector_store %arg5[%c0_25, %c0_26, %c0_27], %44 {strides = array<i32>} : memref<1x1x128xf32, #tpu.memory_space<vmem>>, vector<1x1x128xf32>,
    return
  }
  func.func @transform_0(%arg0: i32) -> (i32, i32, i32) {
    %c0_i32 = arith.constant 0 : i32
    %c0_i32_0 = arith.constant 0 : i32
    %c0_i32_1 = arith.constant 0 : i32
    return %arg0, %c0_i32, %c0_i32_0 : i32, i32, i32
  }
  func.func @transform_1(%arg0: i32) -> (i32, i32, i32) {
    %c0_i32 = arith.constant 0 : i32
    %c0_i32_0 = arith.constant 0 : i32
    %c0_i32_1 = arith.constant 0 : i32
    %c0_i32_2 = arith.constant 0 : i32
    return %c0_i32, %c0_i32_0, %c0_i32_1 : i32, i32, i32
  }
  func.func @transform_2(%arg0: i32) -> (i32, i32) {
    %c0_i32 = arith.constant 0 : i32
    %c0_i32_0 = arith.constant 0 : i32
    %c0_i32_1 = arith.constant 0 : i32
    return %c0_i32, %c0_i32_0 : i32, i32
  }
  func.func @transform_3(%arg0: i32) -> (i32, i32, i32) {
    %c0_i32 = arith.constant 0 : i32
    %c0_i32_0 = arith.constant 0 : i32
    %c0_i32_1 = arith.constant 0 : i32
    return %arg0, %c0_i32, %c0_i32_0 : i32, i32, i32
  }
  func.func @transform_4(%arg0: i32) -> (i32, i32, i32) {
    %c0_i32 = arith.constant 0 : i32
    %c0_i32_0 = arith.constant 0 : i32
    %c0_i32_1 = arith.constant 0 : i32
    return %arg0, %c0_i32, %c0_i32_0 : i32, i32, i32
  }
}

</mosaic_0001>

<bundles_post_ra>
// kernel: cnn_layer_forward.1
= control target key start
LH: loop header
LB: loop body
LE: loop exit
PB: predicated region body
PF: predicated region fallthrough
CT: control target
= control target key end

     0   :  { %9 = vsyncpa [#allocation3], 0  ;;  %s1029_s0 = inlined_call_operand.vmem [shape: bf16[2,32,64], index: 0, kind: input, shape index: {}]   ;;  %s1030_s1 = inlined_call_operand.vmem [shape: bf16[3,64,128], index: 1, kind: input, shape index: {}]   ;;  %s1031_s2 = inlined_call_operand.vmem [shape: f32[1,128], index: 2, kind: input, shape index: {}]   ;;  %s1032_s3 = inlined_call_operand.vmem [shape: f32[2,16,1], index: 3, kind: input, shape index: {}]   ;;  %s1033_s4 = inlined_call_operand.hbm [shape: f32[2,1,128], index: 4, kind: output, shape index: {}]  }
   0x1   :  { %11 = vsyncpa [#allocation3 + $0x1], 0  ;;  %s881_s15 = smov 0   ;;  %s883_s16 = smov 0  }
   0x2   :  { %s885_s17 = smov 0   ;;  %s887_s18 = smov 0  }
   0x3 LB: > { %s902_s19 = sadd.s32 4294967295, %s851_s18   ;;  %s627_s20 = sadd.s32 4294967294, %s851_s18   ;;  %s851_s18 = sphi %s887_s18, %s1039_s18   ;;  %s847_s17 = sphi %s885_s17, %s1038_s17   ;;  %s843_s16 = sphi %s883_s16, %s1037_s16   ;;  %s839_s15 = sphi %s881_s15, %s1036_s15  }
   0x4   : > { %s906_s21 = sadd.s32 1, %s851_s18   ;;  %s118_s22 = sadd.s32 1, %s847_s17 }
   0x5   : > { %s115_s23 = ssub.s32 %s851_s18, %s906_s21  ;;  %p128_p0 = scmp.ne.s32.totalorder %s847_s17, %s843_s16 }
   0x6   : > { %p116_p1 = scmp.eq.s32.totalorder %s115_s23, 0  ;;  %p129_p2 = scmp.eq.s32.totalorder %s902_s19, 1 }
   0x7   : > { %p134_p3 = scmp.ne.s32.totalorder %s843_s16, %s839_s15  ;;  %p135_p4 = scmp.eq.s32.totalorder %s627_s20, 1 }
   0x8   : > { %s917_s24 = scalar_select %p116_p1, %s847_s17, %s118_s22  }
   0x9   : > { %p919_p5 = por %p129_p2, %p128_p0  ;;  %p923_p6 = por %p135_p4, %p134_p3 }
   0xa   : > { %p630_p7 = scmp.ge.s32.totalorder %s851_s18, 1  ;;  %p175_p8 = scmp.lt.s32.totalorder %s851_s18, 3 }
   0xc   : > { %p176_p9 = pnand %p630_p7, %p175_p8 }
   0xd   : > { %v775_v0 = vld [vmem:[%s1030_s1] sm:$0xff] (!%p176_p9)   ;;  %p205_p10 = scmp.lt.s32.totalorder (!%p176_p9), %s902_s19, 1  ;;  %v777_v2 = vld [vmem:[%s1030_s1 + $0x8] sm:$0xff] (!%p176_p9)   ;;  %v779_v4 = vld [vmem:[%s1030_s1 + $0x10] sm:$0xff] (!%p176_p9)   ;;  %v853_v6 = vmov (!%p176_p9), 0   ;;  %vm262_vm0 = vcmask (!%p176_p9), 523264  }
   0xe   : > { %179 = sbr.rel (%p176_p9) target bundleno = 302 (0x12e), region = 36  ;;  %v776_v1 = vld [vmem:[%s1030_s1 + $0x20] sm:$0xff] (!%p176_p9)   ;;  %697 = vmatprep.subr.bf16.mxu0 (!%p176_p9), %v775_v0  ;;  %v778_v3 = vld [vmem:[%s1030_s1 + $0x28] sm:$0xff] (!%p176_p9)   ;;  %v780_v5 = vld [vmem:[%s1030_s1 + $0x30] sm:$0xff] (!%p176_p9)   ;;  %774 = vset.pattern.permute.xlu0 (!%p176_p9), %v853_v6  ;;  %v854_v15 = vmov (!%p176_p9), 0.0   ;;  %vm400_vm3 = vcmask (!%p176_p9), 1046528  }
   0xf   : > { %709 = vmatprep.subr.bf16.mxu1 (!%p176_p9), %v776_v1  ;;  %698 = vmatpush3.bf16.msra.mxu0 (!%p176_p9), %v775_v0  ;;  %v781_v7 = vld [vmem:[%s1030_s1 + $0x18] sm:$0xff] (!%p176_p9)   ;;  %v785_v10 = vld [vmem:[%s1030_s1 + $0x40] sm:$0xff] (!%p176_p9)   ;;  %v786_v14 = vld [vmem:[%s1030_s1 + $0x48] sm:$0xff] (!%p176_p9)   ;;  %vm494_vm4 = vcmask (!%p176_p9), 1045504   ;;  %s203_s27 = sand.u32 (!%p176_p9), 1, %s843_s16   ;;  %s674_s28 = sshll.u32 (!%p176_p9), %s902_s19, 4 }
  0x10   : > { %710 = vmatpush3.bf16.msra.mxu1 (!%p176_p9), %v776_v1  ;;  %699 = vmatprep.subr.bf16.mxu0 (!%p176_p9), %v777_v2  ;;  %v782_v9 = vld [vmem:[%s1030_s1 + $0x38] sm:$0xff] (!%p176_p9)   ;;  %v787_v21 = vld [vmem:[%s1030_s1 + $0x50] sm:$0xff] (!%p176_p9)   ;;  %v671_v48 = vld [vmem:[%s1031_s2] ss:$0 sm:$0xff] (!%p176_p9)  ;;  %s204_s29 = scalar_lea.vmem (!%p176_p9), [#allocation2], %s203_s27  ;;  %s548_s8 = scalar_lea.sflag (!%p176_p9), [#allocation3], %s203_s27 }
  0x11   : > { %711 = vmatprep.subr.bf16.mxu1 (!%p176_p9), %v778_v3  ;;  %v788_v23 = vld [vmem:[%s1030_s1 + $0x58] sm:$0xff] (!%p176_p9)   ;;  %s560_s30 = sshll.u32 (!%p176_p9), %s204_s29, 4  ;;  %s989_s30 = int_to_ptr.vmem [resolvable:$true] %s560_s30 }
  0x12   : > { %s789_s9 = scalar_lea.vmem (!%p176_p9), %s989_s30, 16 }
  0x13   : > { %700 = vmatpush3.bf16.msra.mxu0 (!%p176_p9), %v777_v2  ;;  %p790_p11 = scmp.ne.s32.totalorder (!%p176_p9), %s989_s30, %s789_s9 }
  0x14   : > { %712 = vmatpush3.bf16.msra.mxu1 (!%p176_p9), %v778_v3  ;;  %701 = vmatprep.subr.bf16.mxu0 (!%p176_p9), %v779_v4 }
  0x15   : > { %s206_s7 = scalar_select %p205_p10, %s902_s19, 1  ;;  %713 = vmatprep.subr.bf16.mxu1 %v780_v5 }
  0x16   : > { %p791_p12 = pnand %p790_p11, %p919_p5  ;;  %s855_s19 = smov [#allocation2]  }
  0x17   : > { %s677_s12 = sshll.u32 %s206_s7, 4  ;;  %702 = vmatpush3.bf16.msra.mxu0 %v779_v4  ;;  %s793_s10 = sshll.u32 %s855_s19, 4  ;;  %s794_s10 = int_to_ptr.vmem [resolvable:$false] %s793_s10 }
  0x18   : > { %s209_s23 = scalar_lea.vmem %s1029_s0, %s677_s12  ;;  %s214_s7 = scalar_lea.vmem %s1032_s3, %s677_s12  ;;  %714 = vmatpush3.bf16.msra.mxu1 %v780_v5  ;;  %703 = vmatprep.subr.bf16.mxu0 %v781_v7 }
  0x19   : > { %v783_v8 = vld [vmem:[%s209_s23] sm:$0xff]   ;;  %715 = vmatprep.subr.bf16.mxu1 %v782_v9  ;;  %v784_v11 = vld [vmem:[%s209_s23 + $0x8] sm:$0xff]   ;;  %p792_p13 = pneg %p791_p12  ;;  %s795_s11 = scalar_lea.vmem %s794_s10, 32 }
  0x1a   : > { %705 = vmatprep.mubr.msk.bf16.mxu0 %vm262_vm0, %v783_v8  ;;  %717 = vmatprep.mubr.msk.bf16.mxu1 %vm262_vm0, %v783_v8  ;;  %v515_v12 = vld [vmem:[%s214_s7] sm:$0xff]  ;;  %v516_v13 = vld [vmem:[%s214_s7 + $0x8] sm:$0xff]  ;;  %s987_s7 = scalar_lea.hbm %s1033_s4, %s674_s28  ;;  %p796_p0 = scmp.lt.s32.totalorder %s989_s30, %s794_s10 }
  0x1b   : > { %704 = vmatpush3.bf16.msra.mxu0 %v781_v7  ;;  %vm517_vm1 = vcmp.ne.f32.partialorder %v515_v12, 0.0  ;;  %vm518_vm2 = vcmp.ne.f32.partialorder %v516_v13, 0.0  ;;  %p797_p1 = scmp.lt.s32.totalorder %s795_s11, %s789_s9 }
  0x1c   : > { %716 = vmatpush3.bf16.msra.mxu1 %v782_v9  ;;  %721 = vmatprep.subr.bf16.mxu0 %v785_v10  ;;  %v519_v16 = vsel %vm517_vm1, 1.0, %v854_v15  ;;  %v520_v17 = vsel %vm518_vm2, 1.0, %v854_v15 }
  0x1d   : > { %v672_v18 = vadd.f32 -1.0, %v519_v16  ;;  %v673_v19 = vadd.f32 -1.0, %v520_v17  ;;  %p798_p2 = por %p797_p1, %p796_p0 }
  0x1e   : > { %706 = vmatmul.mubr.msk.bf16.vlgmr.msra.gmra.mrb[0].mxu0 %vm262_vm0, %v784_v11 }
  0x1f   : > { %718 = vmatmul.mubr.msk.bf16.vlgmr.msra.gmra.mrb[0].mxu1 %vm262_vm0, %v784_v11  ;;  %722 = vmatpush3.bf16.msra.mxu0 %v785_v10  ;;  %v523_v20 = vmul.f32 1e+30, %v672_v18  ;;  %v524_v22 = vmul.f32 1e+30, %v673_v19  ;;  %p799_p3 = pnand %p798_p2, %p792_p13 }
  0x20   : > { %723 = vmatprep.subr.bf16.mxu0 %v786_v14  ;;  %729 = vmatprep.mubr.msk.bf16.mxu0 %vm262_vm0, %v783_v8 }
  0x21   : > { %527 = vperm.xlu0 %774, %v523_v20  }
  0x23   : > { %724 = vmatpush3.bf16.msra.mxu0 %v786_v14 }
  0x24   : > { %725 = vmatprep.subr.bf16.mxu0 %v787_v21 }
  0x25   : > { %532 = vperm.xlu0 %774, %v524_v22  }
  0x27   : > { %726 = vmatpush3.bf16.msra.mxu0 %v787_v21 }
  0x28   : > { %727 = vmatprep.subr.bf16.mxu0 %v788_v23 }
  0x2b   : > { %728 = vmatpush3.bf16.msra.mxu0 %v788_v23 }
  0x2e   : > { %730 = vmatmul.mubr.msk.bf16.vlgmr.msra.gmra.mrb[4].mxu0 %vm262_vm0, %v784_v11 }
  0xa0   : > { %v528_v49 = vpop.permute.xlu0 %527 }
  0xa4   : > { %v533_v56 = vpop.permute.xlu0 %532 }
  0xf1   : > { %v707_v24 = vpop.f32.mrb[0].mxu0 }
  0xf2   : > { %v719_v25 = vpop.f32.mrb[0].mxu1  ;;  %v303_v26 = vpop.f32.mrb[1].mxu0 }
  0xf3   : > { %v383_v27 = vpop.f32.mrb[1].mxu1  ;;  %v708_v28 = vpop.f32.mrb[2].mxu0  ;;  %v404_v29 = vrot.slane %v719_v25, 1 }
  0xf4   : > { %v401_v30 = vrot.slane %v383_v27, 1  ;;  %v720_v31 = vpop.f32.mrb[2].mxu1  ;;  %v306_v32 = vpop.f32.mrb[3].mxu0 }
  0xf5   : > { %v386_v33 = vpop.f32.mrb[3].mxu1 }
  0xf6   : > { %v402_v34 = vrot.slane %v386_v33, 1 }
  0xf8   : > { %v403_v35 = vsel %vm400_vm3, %v401_v30, %v402_v34  ;;  %v405_v36 = vsel %vm400_vm3, %v402_v34, %v404_v29 }
  0xf9   : > { %v408_v37 = vadd.f32 %v403_v35, %v303_v26  ;;  %v409_v38 = vadd.f32 %v405_v36, %v306_v32 }
 0x101   : > { %v731_v39 = vpop.f32.mrb[4].mxu0 }
 0x102   : > { %v477_v40 = vpop.f32.mrb[5].mxu0  ;;  %v498_v43 = vrot.slane %v731_v39, 2 }
 0x103   : > { %v732_v41 = vpop.f32.mrb[6].mxu0  ;;  %v495_v44 = vrot.slane %v477_v40, 2 }
 0x104   : > { %v480_v42 = vpop.f32.mrb[7].mxu0 }
 0x105   : > { %v496_v45 = vrot.slane %v480_v42, 2 }
 0x107   : > { %v497_v46 = vsel %vm494_vm4, %v495_v44, %v496_v45  ;;  %v499_v47 = vsel %vm494_vm4, %v496_v45, %v498_v43 }
 0x108   : > { %v502_v50 = vadd.f32 %v497_v46, %v408_v37  ;;  %v503_v51 = vadd.f32 %v499_v47, %v409_v38 }
 0x10a   : > { %v511_v52 = vadd.f32 %v671_v48, %v502_v50  ;;  %v512_v53 = vadd.f32 %v671_v48, %v503_v51 }
 0x10c   : > { %v513_v54 = vmax.f32 %v511_v52, 0.0  ;;  %v514_v55 = vmax.f32 %v512_v53, 0.0 }
 0x10e   : > { %v535_v57 = vadd.f32 %v528_v49, %v513_v54  ;;  %v536_v58 = vadd.f32 %v533_v56, %v514_v55 }
 0x110   : > { %v537_v59 = vmax.f32 %v535_v57, %v536_v58 }
 0x112   : > { %v538_v60 = vrot.slane %v537_v59, 4 }
 0x114   : > { %v539_v61 = vmax.f32 %v537_v59, %v538_v60 }
 0x116   : > { %v540_v62 = vrot.slane %v539_v61, 2 }
 0x118   : > { %v541_v63 = vmax.f32 %v539_v61, %v540_v62 }
 0x11a   : > { %v542_v0 = vrot.slane %v541_v63, 1 }
 0x11c   : > { %v543_v1 = vmax.f32 %v541_v63, %v542_v0 }
 0x11e   : > { %vm544_vm5 = vcmp.lt.f32.partialorder %v543_v1, -1e+29 }
 0x11f   : > { %v545_v2 = vsel %vm544_vm5, 0.0, %v543_v1 }
 0x120   : > { %546 = vst [vmem:[%s204_s29] sm:$0x1] %v545_v2 }
 0x121   : > { %802 = shalt.err (!%p799_p3)
}
 0x122   : > { %s803_s12 = scalar_lea.hbm %s987_s7, 16  ;;  %s807_s20 = scalar_lea.hbm %s1033_s4, 32 }
 0x123   : > { %p804_p4 = scmp.ne.s32.totalorder %s987_s7, %s803_s12  ;;  %p808_p9 = scmp.lt.u32.totalorder %s987_s7, %s1033_s4 }
 0x124   : > { %p809_p10 = scmp.lt.u32.totalorder %s807_s20, %s803_s12  ;;  %p811_p12 = scmp.lt.u32.totalorder %s803_s12, %s987_s7 }
 0x125   : > { %p805_p7 = pnand %p804_p4, %p919_p5 }
 0x126   : > { %p810_p11 = por %p809_p10, %p808_p9 }
 0x127   : > { %p806_p8 = pneg %p805_p7 }
 0x128   : > { %p812_p13 = por %p811_p12, %p810_p11 }
 0x12a   : > { %p813_p0 = pnand %p812_p13, %p806_p8 }
 0x12c   : > { %816 = shalt.err (!%p813_p0)
}
 0x12d   : > { %733 = dma.vmem_to_hbm [thread:$0]  (%p919_p5), %s989_s30, 16, %s987_s7, %s548_s8  }
 0x12e PF: > { %p739_p1 = scmp.ge.s32.totalorder %s851_s18, 2  ;;  %s572_s27 = sand.u32 1, %s839_s15  }
 0x12f   : > { %s573_s28 = scalar_lea.sflag [#allocation3], %s572_s27 }
 0x130   : > { %p736_p2 = pnand %p739_p1, %p923_p6 }
 0x132   : > { %834 = dma.done.wait (!%p736_p2), %s573_s28, 16  }
 0x133   : > { %836 = vsyncadd (!%p736_p2), %s573_s28, 4294967280  ;;  %p14_p3 = scmp.ge.s32.totalorder %s906_s21, 4   ;;  %s1036_s15 = smov %s843_s16 }
 0x134   : > { %s1037_s16 = smov %s847_s17  ;;  %s1038_s17 = smov %s917_s24 }
 0x135   : > { %s1039_s18 = smov %s906_s21  ;;  %16 = sbr.rel (!%p14_p3) target bundleno = 3 (0x3), region = 76 }
 0x13c   :  { %577 = vsyncpa [#allocation3], 1 }
 0x13d   :  { %579 = vsyncpa [#allocation3 + $0x1], 1 }

</bundles_post_ra>
